<compile_context>
chip_gen: v6e
topology: v6e:2x2x1
jax: 0.10.0
libtpu: 0.0.40
codegen_flags: <defaults>
</compile_context>

<pallas_src>
import functools

import jax
import jax.numpy as jnp
from jax import lax
from jax.experimental import pallas as pl
from jax.experimental.pallas import tpu as pltpu


def _patch_merging_kernel(xe_ref, xo_ref, wg_ref, aux_ref, o_ref, *, inv_4c, eps):
    # xe_ref : (Rb, W2, 2C)   even input-row planes (parity gathered by the DMA)
    # xo_ref : (Rb, W2, 2C)   odd  input-row planes
    # wg_ref : (4C, 2C)       diag(gamma) @ Wr, rows ordered [even-h half ; odd-h half]
    # aux_ref: (2, 2C) f32    row 0 = colsum(diag(gamma)@Wr), row 1 = beta @ Wr
    # o_ref  : (Rb*W2, 2C)
    rb, w2, c2 = xe_ref.shape
    m = rb * w2

    # Leading-dim collapse only; free relayout when W2 is a sublane-tile multiple.
    xe = xe_ref[...].reshape(m, c2)
    xo = xo_ref[...].reshape(m, c2)

    xe_f = xe.astype(jnp.float32)
    xo_f = xo.astype(jnp.float32)

    # LayerNorm statistics over the full 4C features (= both 2C halves), in f32.
    s1 = (jnp.sum(xe_f, axis=-1, keepdims=True)
          + jnp.sum(xo_f, axis=-1, keepdims=True))
    s2 = (jnp.sum(xe_f * xe_f, axis=-1, keepdims=True)
          + jnp.sum(xo_f * xo_f, axis=-1, keepdims=True))
    mean = s1 * inv_4c
    var = s2 * inv_4c - mean * mean
    inv_std = lax.rsqrt(var + eps)

    # Reduction matmul with gamma folded into the weights: two K=2C MXU passes.
    s = (jnp.dot(xe, wg_ref[:c2, :], preferred_element_type=jnp.float32)
         + jnp.dot(xo, wg_ref[c2:, :], preferred_element_type=jnp.float32))

    colsum = aux_ref[0:1, :]
    bias = aux_ref[1:2, :]
    out = (s - mean * colsum) * inv_std + bias          # simplified epilogue
    o_ref[...] = out.astype(o_ref.dtype)


def _vmem_budget():
    """Generation-aware scoped-VMEM limit and per-step block budget (bytes)."""
    cap = 64 * 1024 * 1024          # conservative fallback (v7x per-TensorCore VMEM)
    try:
        info = pltpu.get_tpu_info()
        c = getattr(info, "vmem_capacity_bytes", None)
        if c:
            cap = int(c)
    except Exception:
        pass
    vmem_limit = min(int(0.75 * cap), 96 * 1024 * 1024)   # headroom below physical
    block_budget = int(0.50 * vmem_limit)                 # ~50% of usable scoped VMEM
    return vmem_limit, block_budget


def _pick_block_rows(total_rows, w2, c2, itemsize, budget, min_steps=2):
    """Largest divisor Rb of total_rows whose per-step footprint fits `budget`,
    keeping >= min_steps grid steps (megacore / v7x two-TC sharding) and an
    8-sublane-tileable output block when possible."""
    def footprint(rb):
        mb = rb * w2
        io = 6 * mb * c2 * itemsize            # 2 parity in + 1 out, double-buffered
        temps = 6 * mb * c2 * 4                # ~6 f32 (Mb, 2C) temporaries
        weights = 2 * (2 * c2 * c2 + 2 * c2) * itemsize
        return io + temps + weights

    max_rb = max(1, total_rows // max(min_steps, 1))
    cands = [rb for rb in range(1, max_rb + 1) if total_rows % rb == 0]
    aligned = [rb for rb in cands if (rb * w2) % 8 == 0]
    pool = aligned if aligned else cands
    best = pool[0]
    for rb in pool:
        if rb > best and footprint(rb) <= budget:
            best = rb
    return best


def patch_merging(x, norm_gamma, norm_beta, reduction_weight, *, input_resolution,
                  eps=1e-5, block_rows=None):
    """PatchMerging forward.

    x                : (B, H*W, C)
    norm_gamma/beta  : (4C,)     LayerNorm affine parameters
    reduction_weight : (2C, 4C)  nn.Linear(4C, 2C, bias=False).weight (PyTorch layout)
    returns          : (B, (H/2)*(W/2), 2C)
    """
    H, W = input_resolution
    B, L, C = x.shape
    assert L == H * W, "input feature has wrong size"
    assert H % 2 == 0 and W % 2 == 0, "H and W must be even"
    H2, W2 = H // 2, W // 2
    C2, C4 = 2 * C, 4 * C
    itemsize = jnp.dtype(x.dtype).itemsize

    # Permute the 4C feature axis from PyTorch's concat order
    # [x0,x1,x2,x3] = [(h0,w0),(h1,w0),(h0,w1),(h1,w1)] to the memory-natural
    # order [(h0,w0),(h0,w1),(h1,w0),(h1,w1)], so merging is a free reshape of x.
    ar = jnp.arange(C)
    perm = jnp.concatenate([ar, 2 * C + ar, C + ar, 3 * C + ar])

    wr = reduction_weight.astype(jnp.float32).T             # (4C, 2C); y = f @ wr
    gamma = norm_gamma.astype(jnp.float32)
    beta = norm_beta.astype(jnp.float32)
    wg = gamma[perm][:, None] * wr[perm, :]                  # (4C, 2C), gamma folded in
    wg_all = wg.astype(x.dtype)                              # rows: [even-h half ; odd-h half]
    aux = jnp.stack([jnp.sum(wg, axis=0), beta @ wr])        # (2, 2C), f32

    # Free metadata reshape; batch collapsed into the row axis.
    rows = B * H2
    x_view = x.reshape(rows, 2, W2, C2)

    vmem_limit, block_budget = _vmem_budget()
    if block_rows is None:
        block_rows = _pick_block_rows(rows, W2, C2, itemsize, block_budget)
    Rb = block_rows
    assert rows % Rb == 0, "block_rows must divide B*H/2"
    Mb = Rb * W2
    n_blocks = rows // Rb

    kernel = functools.partial(_patch_merging_kernel, inv_4c=1.0 / C4, eps=eps)

    m_total = rows * W2
    cost = pl.CostEstimate(
        flops=2 * m_total * C4 * C2,
        transcendentals=m_total,
        bytes_accessed=(B * L * C + m_total * C2 + C4 * C2) * itemsize + 2 * C2 * 4,
    )

    out = pl.pallas_call(
        kernel,
        out_shape=jax.ShapeDtypeStruct((m_total, C2), x.dtype),
        grid=(n_blocks,),
        in_specs=[
            # Same array twice; the DMA gathers the parity plane (squeezed dim).
            pl.BlockSpec((Rb, pl.Squeezed(), W2, C2), lambda r: (r, 0, 0, 0)),  # even h
            pl.BlockSpec((Rb, pl.Squeezed(), W2, C2), lambda r: (r, 1, 0, 0)),  # odd  h
            pl.BlockSpec((C4, C2), lambda r: (0, 0)),                           # resident
            pl.BlockSpec((2, C2), lambda r: (0, 0)),                            # resident
        ],
        out_specs=pl.BlockSpec((Mb, C2), lambda r: (r, 0)),
        compiler_params=pltpu.CompilerParams(
            dimension_semantics=("parallel",),
            vmem_limit_bytes=vmem_limit),
        cost_estimate=cost,
    )(x_view, x_view, wg_all, aux)

    return out.reshape(B, H2 * W2, C2)                       # free metadata reshape


def _reference(x, gamma, beta, red_w, input_resolution, eps=1e-5):
    """Pure-JAX reference matching the PyTorch forward exactly."""
    H, W = input_resolution
    B, L, C = x.shape
    xv = x.reshape(B, H, W, C)
    x0 = xv[:, 0::2, 0::2, :]
    x1 = xv[:, 1::2, 0::2, :]
    x2 = xv[:, 0::2, 1::2, :]
    x3 = xv[:, 1::2, 1::2, :]
    f = jnp.concatenate([x0, x1, x2, x3], axis=-1).reshape(B, -1, 4 * C)
    mean = jnp.mean(f, axis=-1, keepdims=True)
    var = jnp.mean((f - mean) ** 2, axis=-1, keepdims=True)
    fn = (f - mean) / jnp.sqrt(var + eps) * gamma + beta
    return fn @ red_w.T


if __name__ == "__main__":
    # Small Swin-like shapes: dim=64, 16x16 tokens, batch=2 (2C = 128 -> lane-dense).
    B, H, W, C = 2, 16, 16, 64
    C2, C4 = 2 * C, 4 * C

    key = jax.random.PRNGKey(0)
    kx, kg, kb, kw = jax.random.split(key, 4)
    x = jax.random.normal(kx, (B, H * W, C), dtype=jnp.float32)
    gamma = 1.0 + 0.1 * jax.random.normal(kg, (C4,), dtype=jnp.float32)
    beta = 0.1 * jax.random.normal(kb, (C4,), dtype=jnp.float32)
    red_w = 0.05 * jax.random.normal(kw, (C2, C4), dtype=jnp.float32)

    ref = jax.block_until_ready(_reference(x, gamma, beta, red_w, (H, W)))

    # f32 path.
    out = jax.block_until_ready(
        patch_merging(x, gamma, beta, red_w, input_resolution=(H, W)))
    assert out.shape == (B, (H // 2) * (W // 2), C2), out.shape
    max_err = float(jnp.max(jnp.abs(out - ref)))
    assert jnp.allclose(out, ref, atol=1e-3, rtol=1e-3), max_err

    # bf16 data path (the main HBM-bandwidth lever); looser tolerance vs f32 ref.
    x_bf = x.astype(jnp.bfloat16)
    out_bf = jax.block_until_ready(
        patch_merging(x_bf, gamma, beta, red_w, input_resolution=(H, W)))
    max_err_bf = float(jnp.max(jnp.abs(out_bf.astype(jnp.float32) - ref)))
    assert jnp.allclose(out_bf.astype(jnp.float32), ref, atol=1e-1, rtol=1e-1), max_err_bf

    print("KERNEL_OK")
</pallas_src>

<mosaic_0001>
module attributes {stable_mosaic.version = 11 : i64} {
  func.func @_patch_merging_kernel(%arg0: i32, %arg1: memref<8x1x8x128xf32, #tpu.memory_space<vmem>>, %arg2: memref<8x1x8x128xf32, #tpu.memory_space<vmem>>, %arg3: memref<256x128xf32, #tpu.memory_space<vmem>>, %arg4: memref<2x128xf32, #tpu.memory_space<vmem>>, %arg5: memref<64x128xf32, #tpu.memory_space<vmem>>) attributes {dimension_semantics = [#tpu.dimension_semantics<parallel>], iteration_bounds = array<i64: 2>, scalar_prefetch = 0 : i64, scratch_operands = 0 : i64, tpu.core_type = #tpu.core_type<tc>, window_params = [{transform_indices = @transform_0, window_bounds = array<i64: 8, 1, 8, 128>}, {transform_indices = @transform_1, window_bounds = array<i64: 8, 1, 8, 128>}, {pipeline_mode = #tpu.pipeline_mode<synchronous>, transform_indices = @transform_2, window_bounds = array<i64: 256, 128>}, {pipeline_mode = #tpu.pipeline_mode<synchronous>, transform_indices = @transform_3, window_bounds = array<i64: 2, 128>}, {transform_indices = @transform_4, window_bounds = array<i64: 64, 128>}]} {
    %c0 = arith.constant 0 : index
    %c0_0 = arith.constant 0 : index
    %c0_1 = arith.constant 0 : index
    %c0_2 = arith.constant 0 : index
    %0 = vector.load %arg1[%c0, %c0_0, %c0_1, %c0_2] : memref<8x1x8x128xf32, #tpu.memory_space<vmem>>, vector<8x1x8x128xf32>
    %1 = vector.shape_cast %0 : vector<8x1x8x128xf32> to vector<8x8x128xf32>
    %2 = vector.shape_cast %1 : vector<8x8x128xf32> to vector<64x128xf32>
    %c0_3 = arith.constant 0 : index
    %c0_4 = arith.constant 0 : index
    %c0_5 = arith.constant 0 : index
    %c0_6 = arith.constant 0 : index
    %3 = vector.load %arg2[%c0_3, %c0_4, %c0_5, %c0_6] : memref<8x1x8x128xf32, #tpu.memory_space<vmem>>, vector<8x1x8x128xf32>
    %4 = vector.shape_cast %3 : vector<8x1x8x128xf32> to vector<8x8x128xf32>
    %5 = vector.shape_cast %4 : vector<8x8x128xf32> to vector<64x128xf32>
    %cst = arith.constant dense<0.000000e+00> : vector<64xf32>
    %6 = vector.multi_reduction <add>, %2, %cst [1] : vector<64x128xf32> to vector<64xf32>
    %7 = vector.shape_cast %6 : vector<64xf32> to vector<64x1xf32>
    %cst_7 = arith.constant dense<0.000000e+00> : vector<64xf32>
    %8 = vector.multi_reduction <add>, %5, %cst_7 [1] : vector<64x128xf32> to vector<64xf32>
    %9 = vector.shape_cast %8 : vector<64xf32> to vector<64x1xf32>
    %10 = arith.addf %7, %9 : vector<64x1xf32>
    %11 = arith.mulf %2, %2 : vector<64x128xf32>
    %cst_8 = arith.constant dense<0.000000e+00> : vector<64xf32>
    %12 = vector.multi_reduction <add>, %11, %cst_8 [1] : vector<64x128xf32> to vector<64xf32>
    %13 = vector.shape_cast %12 : vector<64xf32> to vector<64x1xf32>
    %14 = arith.mulf %5, %5 : vector<64x128xf32>
    %cst_9 = arith.constant dense<0.000000e+00> : vector<64xf32>
    %15 = vector.multi_reduction <add>, %14, %cst_9 [1] : vector<64x128xf32> to vector<64xf32>
    %16 = vector.shape_cast %15 : vector<64xf32> to vector<64x1xf32>
    %17 = arith.addf %13, %16 : vector<64x1xf32>
    %cst_10 = arith.constant 3.906250e-03 : f32
    %18 = vector.broadcast %cst_10 : f32 to vector<64x1xf32>
    %19 = arith.mulf %10, %18 : vector<64x1xf32>
    %cst_11 = arith.constant 3.906250e-03 : f32
    %20 = vector.broadcast %cst_11 : f32 to vector<64x1xf32>
    %21 = arith.mulf %17, %20 : vector<64x1xf32>
    %22 = arith.mulf %19, %19 : vector<64x1xf32>
    %23 = arith.subf %21, %22 : vector<64x1xf32>
    %cst_12 = arith.constant 9.99999974E-6 : f32
    %24 = vector.broadcast %cst_12 : f32 to vector<64x1xf32>
    %25 = arith.addf %23, %24 : vector<64x1xf32>
    %26 = math.rsqrt %25 : vector<64x1xf32>
    %c0_13 = arith.constant 0 : index
    %c0_14 = arith.constant 0 : index
    %27 = vector.load %arg3[%c0_13, %c0_14] : memref<256x128xf32, #tpu.memory_space<vmem>>, vector<128x128xf32>
    %cst_15 = arith.constant dense<0.000000e+00> : vector<64x128xf32>
    %28 = tpu.matmul %2, %27, %cst_15 {dimension_numbers = #tpu.dot_dimension_numbers<[1], [0], [0], [1], [0, 0, 1, 1], [], []>} : vector<64x128xf32>, vector<128x128xf32>, vector<64x128xf32> -> vector<64x128xf32>
    %c128 = arith.constant 128 : index
    %c0_16 = arith.constant 0 : index
    %29 = vector.load %arg3[%c128, %c0_16] : memref<256x128xf32, #tpu.memory_space<vmem>>, vector<128x128xf32>
    %cst_17 = arith.constant dense<0.000000e+00> : vector<64x128xf32>
    %30 = tpu.matmul %5, %29, %cst_17 {dimension_numbers = #tpu.dot_dimension_numbers<[1], [0], [0], [1], [0, 0, 1, 1], [], []>} : vector<64x128xf32>, vector<128x128xf32>, vector<64x128xf32> -> vector<64x128xf32>
    %31 = arith.addf %28, %30 : vector<64x128xf32>
    %c0_18 = arith.constant 0 : index
    %c0_19 = arith.constant 0 : index
    %32 = vector.load %arg4[%c0_18, %c0_19] : memref<2x128xf32, #tpu.memory_space<vmem>>, vector<1x128xf32>
    %c1 = arith.constant 1 : index
    %c0_20 = arith.constant 0 : index
    %33 = vector.load %arg4[%c1, %c0_20] : memref<2x128xf32, #tpu.memory_space<vmem>>, vector<1x128xf32>
    %34 = vector.broadcast %19 : vector<64x1xf32> to vector<64x128xf32>
    %35 = vector.broadcast %32 : vector<1x128xf32> to vector<64x128xf32>
    %36 = arith.mulf %34, %35 : vector<64x128xf32>
    %37 = arith.subf %31, %36 : vector<64x128xf32>
    %38 = vector.broadcast %26 : vector<64x1xf32> to vector<64x128xf32>
    %39 = arith.mulf %37, %38 : vector<64x128xf32>
    %40 = vector.broadcast %33 : vector<1x128xf32> to vector<64x128xf32>
    %41 = arith.addf %39, %40 : vector<64x128xf32>
    %c0_21 = arith.constant 0 : index
    %c0_22 = arith.constant 0 : index
    %42 = vector.load %arg5[%c0_21, %c0_22] : memref<64x128xf32, #tpu.memory_space<vmem>>, vector<64x128xf32>
    tpu.vector_store %arg5[%c0_21, %c0_22], %41 {strides = array<i32>} : memref<64x128xf32, #tpu.memory_space<vmem>>, vector<64x128xf32>,
    return
  }
  func.func @transform_0(%arg0: i32) -> (i32, i32, i32, i32) {
    %c0_i32 = arith.constant 0 : i32
    %c0_i32_0 = arith.constant 0 : i32
    %c0_i32_1 = arith.constant 0 : i32
    %c0_i32_2 = arith.constant 0 : i32
    return %arg0, %c0_i32, %c0_i32_0, %c0_i32_1 : i32, i32, i32, i32
  }
  func.func @transform_1(%arg0: i32) -> (i32, i32, i32, i32) {
    %c1_i32 = arith.constant 1 : i32
    %c0_i32 = arith.constant 0 : i32
    %c0_i32_0 = arith.constant 0 : i32
    %c0_i32_1 = arith.constant 0 : i32
    return %arg0, %c1_i32, %c0_i32, %c0_i32_0 : i32, i32, i32, i32
  }
  func.func @transform_2(%arg0: i32) -> (i32, i32) {
    %c0_i32 = arith.constant 0 : i32
    %c0_i32_0 = arith.constant 0 : i32
    %c0_i32_1 = arith.constant 0 : i32
    return %c0_i32, %c0_i32_0 : i32, i32
  }
  func.func @transform_3(%arg0: i32) -> (i32, i32) {
    %c0_i32 = arith.constant 0 : i32
    %c0_i32_0 = arith.constant 0 : i32
    %c0_i32_1 = arith.constant 0 : i32
    return %c0_i32, %c0_i32_0 : i32, i32
  }
  func.func @transform_4(%arg0: i32) -> (i32, i32) {
    %c0_i32 = arith.constant 0 : i32
    %c0_i32_0 = arith.constant 0 : i32
    return %arg0, %c0_i32 : i32, i32
  }
}

</mosaic_0001>

<bundles_post_ra>
// kernel: tpu_custom_call.1
= control target key start
LH: loop header
LB: loop body
LE: loop exit
PB: predicated region body
PF: predicated region fallthrough
CT: control target
= control target key end

     0   :  { %s1702_s0 = inlined_call_operand.hbm [shape: f32[16,2,8,128], index: 0, kind: input, shape index: {}]   ;;  %s1703_s1 = inlined_call_operand.hbm [shape: f32[16,2,8,128], index: 1, kind: input, shape index: {}]   ;;  %s1704_s2 = inlined_call_operand.hbm [shape: f32[256,128], index: 2, kind: input, shape index: {}]   ;;  %s1705_s3 = inlined_call_operand.vmem [shape: f32[2,128], index: 3, kind: input, shape index: {}]   ;;  %s1706_s4 = inlined_call_operand.hbm [shape: f32[128,128], index: 4, kind: output, shape index: {}]  }
   0x1   :  { %1711 = sst [smem:[#allocation14_spill]] %s1702_s0 }
   0x2   :  { %1712 = sst [smem:[#allocation15_spill]] %s1704_s2 }
   0x3   :  { %9 = vsyncpa [#allocation3], 0 }
   0x4   :  { %11 = vsyncpa [#allocation3 + $0x1], 0 }
   0x5   :  { %12 = vsyncpa [#allocation6], 0 }
   0x6   :  { %14 = vsyncpa [#allocation6 + $0x1], 0 }
   0x7   :  { %15 = vsyncpa [#allocation4], 0 }
   0x8   :  { %17 = vsyncpa [#allocation4 + $0x1], 0  ;;  %s1286_s15 = smov 0   ;;  %s1288_s16 = smov 0  }
   0x9   :  { %s1290_s17 = smov 0   ;;  %s1292_s18 = smov 0  }
   0xa LB: > { %s1307_s19 = sadd.s32 4294967295, %s1250_s18   ;;  %s849_s20 = sadd.s32 4294967294, %s1250_s18   ;;  %s1250_s18 = sphi %s1292_s18, %s1733_s18   ;;  %s1246_s17 = sphi %s1290_s17, %s1732_s17   ;;  %s1242_s16 = sphi %s1288_s16, %s1731_s16   ;;  %s1238_s15 = sphi %s1286_s15, %s1730_s15  }
   0xb   : > { %s1311_s21 = sadd.s32 1, %s1250_s18   ;;  %s30_s22 = sadd.s32 1, %s1246_s17 }
   0xc   : > { %s27_s23 = ssub.s32 %s1250_s18, %s1311_s21  ;;  %p37_p0 = scmp.ne.s32.totalorder %s1246_s17, %s1242_s16 }
   0xd   : > { %p28_p1 = scmp.eq.s32.totalorder %s27_s23, 0  ;;  %p38_p2 = scmp.eq.s32.totalorder %s1250_s18, 0 }
   0xe   : > { %p43_p3 = scmp.ne.s32.totalorder %s1242_s16, %s1238_s15  ;;  %p44_p4 = scmp.eq.s32.totalorder %s1307_s19, 0 }
   0xf   : > { %s1323_s24 = scalar_select %p28_p1, %s1246_s17, %s30_s22  }
  0x10   : > { %p1325_p5 = por %p38_p2, %p37_p0  ;;  %p1331_p6 = por %p44_p4, %p43_p3 }
  0x11   : > { %1713 = sst [smem:[#allocation13_spill]] %s1323_s24  ;;  %p135_p7 = scmp.eq.s32.totalorder %s1307_s19, 1 }
  0x12   : > { %s1715_s26 = scalar_select %p1331_p6, 1, 0 }
  0x13   : > { %p141_p8 = scmp.eq.s32.totalorder %s849_s20, 1  ;;  %p850_p9 = scmp.ge.s32.totalorder %s1250_s18, 1 }
  0x14   : > { %p148_p10 = scmp.lt.s32.totalorder %s1250_s18, 3  ;;  %p1338_p11 = por %p135_p7, %p37_p0 }
  0x15   : > { %p1342_p12 = por %p141_p8, %p43_p3  ;;  %s1252_s30 = smov [#allocation7]  }
  0x16   : > { %s1716_s27 = scalar_select %p1338_p11, 1, 0 }
  0x17   : > { %s1717_s28 = scalar_select %p1342_p12, 1, 0 }
  0x18   : > { %p1346_p13 = pnand %p850_p9, %p148_p10  ;;  %s160_s5 = sshll.u32 %s1252_s30, 4  ;;  %s161_s5 = int_to_ptr.vmem [resolvable:$true] %s160_s5 }
  0x19   : > { %p1038_p3 = scmp.lt.s32.totalorder %s1250_s18, 2  ;;  %s177_s7 = sand.u32 1, %s1246_s17  }
  0x1a   : > { %s1718_s29 = scalar_select %p1346_p13, 1, 0 }
  0x1b   : > { %p1022_p1 = pneg %p1346_p13  ;;  %s1106_s8 = scalar_lea.vmem %s161_s5, 4096 }
  0x1c   : > { %p1107_p8 = scmp.ne.s32.totalorder %s161_s5, %s1106_s8  ;;  %p1114_p12 = scmp.lt.s32.totalorder %s161_s5, %s161_s5 }
  0x1d   : > { %p1354_p2 = pnand %p1022_p1, %p44_p4  ;;  %p1115_p11 = scmp.lt.s32.totalorder %s1106_s8, %s1106_s8 }
  0x1f   : > { %p1097_p7 = pneg %p1354_p2  ;;  %p1116_p6 = por %p1115_p11, %p1114_p12 }
  0x21   : > { %p1109_p9 = pnand %p1107_p8, %p1097_p7 }
  0x23   : > { %p1110_p10 = pneg %p1109_p9 }
  0x25   : > { %p1117_p13 = pnand %p1116_p6, %p1110_p10 }
  0x27   : > { %1120 = shalt.err (!%p1117_p13)
}
  0x28   : > { %s1253_s9 = smov 128   ;;  %s1254_s10 = smov 8  }
  0x29   : > { %s1720_s2 = sld [smem:[#allocation15_spill]]  ;;  %p1375_p11 = pnand %p1038_p3, %p1325_p5 }
  0x2a   : > { %s1379_s14 = sshll.u32 %s177_s7, 6  ;;  %s1710_s20 = sshll.u32 %s1250_s18, 11 }
  0x2b   : > { %s1722_s0 = sld [smem:[#allocation14_spill]]  ;;  %s181_s25 = scalar_lea.vmem [#allocation2], %s1379_s14 }
  0x2c   : > { %s1392_s6 = scalar_lea.sflag [#allocation3], %s177_s7  ;;  %p1123_p6 = pneg %p1375_p11 }
  0x2f   : > { %1025 = dma.hbm_to_vmem [thread:$0]  (!%p1354_p2), %s1720_s2, 4096, %s161_s5, [#allocation6], %s1253_s9, %s1253_s9, %s1254_s10  }
  0x30   : > { %s189_s5 = sshll.u32 %s181_s25, 4  ;;  %s1390_s5 = int_to_ptr.vmem [resolvable:$true] %s189_s5 }
  0x31   : > { %s1387_s30 = scalar_lea.hbm %s1722_s0, %s1710_s20  ;;  %s1126_s22 = scalar_lea.hbm %s1722_s0, 4096 }
  0x32   : > { %s1121_s8 = scalar_lea.hbm %s1387_s30, 1024  ;;  %p1127_p1 = scmp.lt.s32.totalorder %s1387_s30, %s1722_s0 }
  0x33   : > { %p1122_p5 = scmp.ne.s32.totalorder %s1387_s30, %s1121_s8  ;;  %p1128_p2 = scmp.lt.s32.totalorder %s1126_s22, %s1121_s8 }
  0x35   : > { %p1124_p12 = pnand %p1123_p6, %p1122_p5  ;;  %p1129_p3 = por %p1128_p2, %p1127_p1 }
  0x37   : > { %p1125_p13 = pneg %p1124_p12 }
  0x39   : > { %p1130_p7 = pnand %p1129_p3, %p1125_p13 }
  0x3b   : > { %1133 = shalt.err (!%p1130_p7)
}
  0x3c   : > { %s1134_s7 = scalar_lea.vmem %s1390_s5, 1024  ;;  %s1255_s25 = smov [#allocation2]  }
  0x3d   : > { %p1135_p8 = scmp.ne.s32.totalorder %s1390_s5, %s1134_s7  ;;  %s1139_s11 = sshll.u32 %s1255_s25, 4  ;;  %s1140_s11 = int_to_ptr.vmem [resolvable:$false] %s1139_s11 }
  0x3e   : > { %s1141_s12 = scalar_lea.vmem %s1140_s11, 2048  ;;  %p1142_p5 = scmp.lt.s32.totalorder %s1390_s5, %s1140_s11 }
  0x3f   : > { %p1137_p9 = pnand %p1135_p8, %p1123_p6  ;;  %p1143_p12 = scmp.lt.s32.totalorder %s1141_s12, %s1134_s7 }
  0x41   : > { %p1138_p10 = pneg %p1137_p9  ;;  %p1144_p0 = por %p1143_p12, %p1142_p5 }
  0x43   : > { %p1145_p1 = pnand %p1144_p0, %p1138_p10 }
  0x45   : > { %1148 = shalt.err (!%p1145_p1)
}
  0x46   : > { %s1256_s20 = smov 256   ;;  %s1723_s8 = sshll.u32 %s1250_s18, 11 }
  0x47   : > { %1029 = dma.hbm_to_vmem [thread:$0]  (!%p1375_p11), %s1387_s30, 1024, %s1390_s5, %s1392_s6, %s1256_s20, %s1253_s9, %s1254_s10  }
  0x48   : > { %s782_s7 = scalar_lea.hbm %s1703_s1, %s1723_s8  ;;  %s203_s25 = scalar_lea.vmem [#allocation5], %s1379_s14 }
  0x49   : > { %s212_s11 = sshll.u32 %s203_s25, 4  ;;  %s1428_s12 = scalar_lea.hbm %s782_s7, 128  ;;  %s1430_s11 = int_to_ptr.vmem [resolvable:$true] %s212_s11 }
  0x4a   : > { %s199_s0 = sand.u32 1, %s1250_s18   ;;  %s1177_s24 = scalar_lea.hbm %s782_s7, 1152 }
  0x4b   : > { %s200_s2 = scalar_lea.sflag [#allocation6], %s199_s0  ;;  %p1150_p0 = scmp.ne.s32.totalorder %s1428_s12, %s1177_s24 }
  0x4c   : > { %s1154_s6 = scalar_lea.hbm %s1703_s1, 4096  ;;  %p1155_p3 = scmp.lt.s32.totalorder %s1428_s12, %s1703_s1 }
  0x4d   : > { %p1152_p13 = pnand %p1150_p0, %p1123_p6  ;;  %p1156_p7 = scmp.lt.s32.totalorder %s1154_s6, %s1177_s24 }
  0x4f   : > { %p1153_p2 = pneg %p1152_p13  ;;  %p1157_p8 = por %p1156_p7, %p1155_p3 }
  0x51   : > { %p1158_p9 = pnand %p1157_p8, %p1153_p2 }
  0x53   : > { %1161 = shalt.err (!%p1158_p9)
}
  0x54   : > { %s1162_s0 = scalar_lea.vmem %s1430_s11, 1024  ;;  %s1257_s22 = smov [#allocation5]  }
  0x55   : > { %p1163_p10 = scmp.ne.s32.totalorder %s1430_s11, %s1162_s0  ;;  %s1167_s23 = sshll.u32 %s1257_s22, 4  ;;  %s1168_s23 = int_to_ptr.vmem [resolvable:$false] %s1167_s23 }
  0x56   : > { %s1169_s7 = scalar_lea.vmem %s1168_s23, 2048  ;;  %p1170_p1 = scmp.lt.s32.totalorder %s1430_s11, %s1168_s23 }
  0x57   : > { %p1165_p5 = pnand %p1163_p10, %p1123_p6  ;;  %p1171_p0 = scmp.lt.s32.totalorder %s1169_s7, %s1162_s0 }
  0x59   : > { %p1166_p12 = pneg %p1165_p5  ;;  %p1172_p13 = por %p1171_p0, %p1170_p1 }
  0x5b   : > { %p1173_p3 = pnand %p1172_p13, %p1166_p12 }
  0x5d   : > { %1176 = shalt.err (!%p1173_p3)
}
  0x5e   : > { %1032 = dma.hbm_to_vmem [thread:$0]  (!%p1375_p11), %s1428_s12, 1024, %s1430_s11, %s200_s2, %s1256_s20, %s1253_s9, %s1254_s10  }
  0x5f   : > { %p1724_p6 = scmp.ne.s32.totalorder %s1718_s29, 0 }
  0x60   : > { %s1460_s24 = sand.u32 (!%p1724_p6), 1, %s1242_s16   ;;  %p1725_p2 = scmp.ne.s32.totalorder (!%p1724_p6), %s1715_s26, 0 }
  0x61   : > { %224 = sbr.rel (%p1724_p6) target bundleno = 380 (0x17c), region = 36  ;;  %s1463_s25 = sshll.u32 (!%p1724_p6), %s1460_s24, 6 }
  0x62   : > { %s227_s30 = scalar_lea.sflag (!%p1724_p6), [#allocation3], %s1460_s24  ;;  %s1467_s13 = scalar_lea.vmem (!%p1724_p6), [#allocation2], %s1463_s25 }
  0x66   : > { %1221 = dma.done.wait (%p1725_p2), %s227_s30, 1024  }
  0x67   : > { %1223 = vsyncadd (%p1725_p2), %s227_s30, 4294966272  ;;  %s235_s2 = sand.u32 1, %s1307_s19   ;;  %s1475_s9 = scalar_lea.vmem [#allocation5], %s1463_s25 }
  0x68   : > { %s236_s29 = scalar_lea.sflag [#allocation6], %s235_s2 }
  0x69   : > { %1225 = dma.done.wait (%p1725_p2), %s236_s29, 1024  }
  0x6a   : > { %1227 = vsyncadd (%p1725_p2), %s236_s29, 4294966272 }
  0x6b   : > { %1229 = dma.done.wait (%p44_p4), [#allocation6], 4096  }
  0x6c   : > { %1231 = vsyncadd (%p44_p4), [#allocation6], 4294963200  ;;  %v467_v0 = vld [vmem:[#allocation7 + $0xf8] sm:$0xff]  ;;  %v1486_v2 = vld [vmem:[%s1467_s13 + $0x10] sm:$0xff]  ;;  %s1632_s12 = scalar_lea.vmem [#allocation8], %s1463_s25  ;;  %s875_s5 = sshll.u32 %s1307_s19, 10 }
  0x6d   : > { %v451_v1 = vld [vmem:[#allocation7 + $0x78] sm:$0xff]  ;;  %924 = vmatprep.subr.mxu0 %v467_v0  ;;  %v1489_v3 = vld [vmem:[%s1467_s13] sm:$0xff]  ;;  %v466_v4 = vld [vmem:[#allocation7 + $0xf0] sm:$0xff]  ;;  %296 = vadd.xlane.f32.xlu1 %v1486_v2  ;;  %v334_v51 = vmul.f32 %v1486_v2, %v1486_v2  ;;  %s742_s6 = sshll.u32 %s1632_s12, 4  ;;  %s1654_s0 = scalar_lea.hbm %s1706_s4, %s875_s5  ;;  %s1656_s6 = int_to_ptr.vmem [resolvable:$true] %s742_s6 }
  0x6e   : > { %968 = vmatprep.subr.mxu1 %v451_v1  ;;  %v450_v5 = vld [vmem:[#allocation7 + $0x70] sm:$0xff]  ;;  %292 = vadd.xlane.f32.xlu0 %v1489_v3  ;;  %v465_v6 = vld [vmem:[#allocation7 + $0xe8] sm:$0xff]  ;;  %v1494_v8 = vld [vmem:[%s1467_s13 + $0x18] sm:$0xff]  ;;  %v332_v49 = vmul.f32 %v1489_v3, %v1489_v3  ;;  %s729_s19 = scalar_lea.sflag [#allocation4], %s1460_s24  ;;  %s1178_s22 = scalar_lea.vmem %s1656_s6, 1024 }
  0x6f   : > { %925 = vmatpush3.msra.mxu0 %v467_v0  ;;  %969 = vmatpush3.msra.mxu1 %v451_v1  ;;  %v449_v7 = vld [vmem:[#allocation7 + $0x68] sm:$0xff]  ;;  %v464_v10 = vld [vmem:[#allocation7 + $0xe0] sm:$0xff]  ;;  %v463_v12 = vld [vmem:[#allocation7 + $0xd8] sm:$0xff]  ;;  %v335_v50 = vmul.f32 %v1494_v8, %v1494_v8  ;;  %p1179_p4 = scmp.ne.s32.totalorder %s1656_s6, %s1178_s22  ;;  %p1726_p11 = scmp.ne.s32.totalorder %s1716_s27, 0 }
  0x70   : > { %926 = vmatprep.subr.mxu0 %v466_v4  ;;  %970 = vmatprep.subr.mxu1 %v450_v5  ;;  %v1497_v9 = vld [vmem:[%s1467_s13 + $0x8] sm:$0xff]  ;;  %v448_v11 = vld [vmem:[#allocation7 + $0x60] sm:$0xff]  ;;  %v447_v13 = vld [vmem:[#allocation7 + $0x58] sm:$0xff]  ;;  %s1258_s23 = smov [#allocation8]  }
  0x71   : > { %927 = vmatpush3.msra.mxu0 %v466_v4  ;;  %971 = vmatpush3.msra.mxu1 %v450_v5  ;;  %v1502_v14 = vld [vmem:[%s1467_s13 + $0x28] sm:$0xff]  ;;  %v1505_v15 = vld [vmem:[%s1467_s13 + $0x20] sm:$0xff]  ;;  %v462_v16 = vld [vmem:[#allocation7 + $0xd0] sm:$0xff]  ;;  %v333_v48 = vmul.f32 %v1497_v9, %v1497_v9  ;;  %p1180_p7 = pnand %p1179_p4, %p1726_p11  ;;  %s1182_s7 = sshll.u32 %s1258_s23, 4  ;;  %s1183_s7 = int_to_ptr.vmem [resolvable:$false] %s1182_s7 }
  0x72   : > { %928 = vmatprep.subr.mxu0 %v465_v6  ;;  %972 = vmatprep.subr.mxu1 %v449_v7  ;;  %v446_v17 = vld [vmem:[#allocation7 + $0x50] sm:$0xff]  ;;  %v461_v18 = vld [vmem:[#allocation7 + $0xc8] sm:$0xff]  ;;  %v1510_v20 = vld [vmem:[%s1467_s13 + $0x38] sm:$0xff]  ;;  %v337_v52 = vmul.f32 %v1502_v14, %v1502_v14  ;;  %v336_v53 = vmul.f32 %v1505_v15, %v1505_v15  ;;  %s1184_s25 = scalar_lea.vmem %s1183_s7, 2048  ;;  %p1185_p9 = scmp.lt.s32.totalorder %s1656_s6, %s1183_s7 }
  0x73   : > { %298 = vadd.xlane.f32.xlu1 %v1494_v8  ;;  %294 = vadd.xlane.f32.xlu0 %v1497_v9  ;;  %v445_v19 = vld [vmem:[#allocation7 + $0x48] sm:$0xff]  ;;  %v1513_v21 = vld [vmem:[%s1467_s13 + $0x30] sm:$0xff]  ;;  %v460_v22 = vld [vmem:[#allocation7 + $0xc0] sm:$0xff]  ;;  %v339_v54 = vmul.f32 %v1510_v20, %v1510_v20  ;;  %p1181_p8 = pneg %p1180_p7  ;;  %p1186_p10 = scmp.lt.s32.totalorder %s1184_s25, %s1178_s22 }
  0x74   : > { %929 = vmatpush3.msra.mxu0 %v465_v6  ;;  %973 = vmatpush3.msra.mxu1 %v449_v7  ;;  %v444_v23 = vld [vmem:[#allocation7 + $0x40] sm:$0xff]  ;;  %v459_v24 = vld [vmem:[#allocation7 + $0xb8] sm:$0xff]  ;;  %v1518_v26 = vld [vmem:[%s1475_s9 + $0x8] sm:$0xff]  ;;  %v338_v55 = vmul.f32 %v1513_v21, %v1513_v21 }
  0x75   : > { %930 = vmatprep.subr.mxu0 %v464_v10  ;;  %974 = vmatprep.subr.mxu1 %v448_v11  ;;  %v443_v25 = vld [vmem:[#allocation7 + $0x38] sm:$0xff]  ;;  %v1521_v27 = vld [vmem:[%s1475_s9] sm:$0xff]  ;;  %v458_v28 = vld [vmem:[#allocation7 + $0xb0] sm:$0xff]  ;;  %v357_v56 = vmul.f32 %v1518_v26, %v1518_v26  ;;  %p1187_p5 = por %p1186_p10, %p1185_p9 }
  0x76   : > { %931 = vmatpush3.msra.mxu0 %v464_v10  ;;  %975 = vmatpush3.msra.mxu1 %v448_v11  ;;  %v442_v29 = vld [vmem:[#allocation7 + $0x30] sm:$0xff]  ;;  %v457_v30 = vld [vmem:[#allocation7 + $0xa8] sm:$0xff]  ;;  %v1526_v32 = vld [vmem:[%s1475_s9 + $0x18] sm:$0xff]  ;;  %v356_v57 = vmul.f32 %v1521_v27, %v1521_v27 }
  0x77   : > { %932 = vmatprep.subr.mxu0 %v463_v12  ;;  %976 = vmatprep.subr.mxu1 %v447_v13  ;;  %v441_v31 = vld [vmem:[#allocation7 + $0x28] sm:$0xff]  ;;  %v1529_v33 = vld [vmem:[%s1475_s9 + $0x10] sm:$0xff]  ;;  %v456_v34 = vld [vmem:[#allocation7 + $0xa0] sm:$0xff]  ;;  %v359_v58 = vmul.f32 %v1526_v32, %v1526_v32  ;;  %p1188_p12 = pnand %p1187_p5, %p1181_p8 }
  0x78   : > { %302 = vadd.xlane.f32.xlu1 %v1502_v14  ;;  %300 = vadd.xlane.f32.xlu0 %v1505_v15  ;;  %v440_v35 = vld [vmem:[#allocation7 + $0x20] sm:$0xff]  ;;  %v455_v36 = vld [vmem:[#allocation7 + $0x98] sm:$0xff]  ;;  %v1534_v38 = vld [vmem:[%s1475_s9 + $0x28] sm:$0xff]  ;;  %v358_v59 = vmul.f32 %v1529_v33, %v1529_v33 }
  0x79   : > { %933 = vmatpush3.msra.mxu0 %v463_v12  ;;  %977 = vmatpush3.msra.mxu1 %v447_v13  ;;  %v439_v37 = vld [vmem:[#allocation7 + $0x18] sm:$0xff]  ;;  %v1537_v39 = vld [vmem:[%s1475_s9 + $0x20] sm:$0xff]  ;;  %v454_v40 = vld [vmem:[#allocation7 + $0x90] sm:$0xff]  ;;  %v361_v60 = vmul.f32 %v1534_v38, %v1534_v38 }
  0x7a   : > { %934 = vmatprep.subr.mxu0 %v462_v16  ;;  %978 = vmatprep.subr.mxu1 %v446_v17  ;;  %v438_v41 = vld [vmem:[#allocation7 + $0x10] sm:$0xff]  ;;  %v453_v42 = vld [vmem:[#allocation7 + $0x88] sm:$0xff]  ;;  %v291_v44 = vld [vmem:[%s1475_s9 + $0x38] sm:$0xff]  ;;  %v360_v61 = vmul.f32 %v1537_v39, %v1537_v39 }
  0x7b   : > { %935 = vmatpush3.msra.mxu0 %v462_v16  ;;  %979 = vmatpush3.msra.mxu1 %v446_v17  ;;  %v437_v43 = vld [vmem:[#allocation7 + $0x8] sm:$0xff]  ;;  %v290_v45 = vld [vmem:[%s1475_s9 + $0x30] sm:$0xff]  ;;  %v452_v46 = vld [vmem:[#allocation7 + $0x80] sm:$0xff]  ;;  %v363_v62 = vmul.f32 %v291_v44, %v291_v44 }
  0x7c   : > { %936 = vmatprep.subr.mxu0 %v461_v18  ;;  %980 = vmatprep.subr.mxu1 %v445_v19  ;;  %v436_v47 = vld [vmem:[#allocation7] sm:$0xff]  ;;  %v362_v63 = vmul.f32 %v290_v45, %v290_v45 }
  0x7d   : > { %306 = vadd.xlane.f32.xlu1 %v1510_v20  ;;  %304 = vadd.xlane.f32.xlu0 %v1513_v21 }
  0x7e   : > { %937 = vmatpush3.msra.mxu0 %v461_v18  ;;  %981 = vmatpush3.msra.mxu1 %v445_v19 }
  0x7f   : > { %938 = vmatprep.subr.mxu0 %v460_v22  ;;  %982 = vmatprep.subr.mxu1 %v444_v23 }
  0x80   : > { %939 = vmatpush3.msra.mxu0 %v460_v22  ;;  %983 = vmatpush3.msra.mxu1 %v444_v23 }
  0x81   : > { %940 = vmatprep.subr.mxu0 %v459_v24  ;;  %984 = vmatprep.subr.mxu1 %v443_v25 }
  0x82   : > { %310 = vadd.xlane.f32.xlu1 %v1518_v26  ;;  %308 = vadd.xlane.f32.xlu0 %v1521_v27 }
  0x83   : > { %941 = vmatpush3.msra.mxu0 %v459_v24  ;;  %985 = vmatpush3.msra.mxu1 %v443_v25 }
  0x84   : > { %942 = vmatprep.subr.mxu0 %v458_v28  ;;  %986 = vmatprep.subr.mxu1 %v442_v29 }
  0x85   : > { %943 = vmatpush3.msra.mxu0 %v458_v28  ;;  %987 = vmatpush3.msra.mxu1 %v442_v29 }
  0x86   : > { %944 = vmatprep.subr.mxu0 %v457_v30  ;;  %988 = vmatprep.subr.mxu1 %v441_v31 }
  0x87   : > { %314 = vadd.xlane.f32.xlu1 %v1526_v32  ;;  %312 = vadd.xlane.f32.xlu0 %v1529_v33 }
  0x88   : > { %945 = vmatpush3.msra.mxu0 %v457_v30  ;;  %989 = vmatpush3.msra.mxu1 %v441_v31 }
  0x89   : > { %946 = vmatprep.subr.mxu0 %v456_v34  ;;  %990 = vmatprep.subr.mxu1 %v440_v35 }
  0x8a   : > { %947 = vmatpush3.msra.mxu0 %v456_v34  ;;  %991 = vmatpush3.msra.mxu1 %v440_v35 }
  0x8b   : > { %948 = vmatprep.subr.mxu0 %v455_v36  ;;  %992 = vmatprep.subr.mxu1 %v439_v37 }
  0x8c   : > { %318 = vadd.xlane.f32.xlu1 %v1534_v38  ;;  %316 = vadd.xlane.f32.xlu0 %v1537_v39 }
  0x8d   : > { %949 = vmatpush3.msra.mxu0 %v455_v36  ;;  %993 = vmatpush3.msra.mxu1 %v439_v37 }
  0x8e   : > { %950 = vmatprep.subr.mxu0 %v454_v40  ;;  %994 = vmatprep.subr.mxu1 %v438_v41 }
  0x8f   : > { %951 = vmatpush3.msra.mxu0 %v454_v40  ;;  %995 = vmatpush3.msra.mxu1 %v438_v41 }
  0x90   : > { %952 = vmatprep.subr.mxu0 %v453_v42  ;;  %996 = vmatprep.subr.mxu1 %v437_v43 }
  0x91   : > { %322 = vadd.xlane.f32.xlu1 %v291_v44  ;;  %320 = vadd.xlane.f32.xlu0 %v290_v45 }
  0x92   : > { %953 = vmatpush3.msra.mxu0 %v453_v42  ;;  %997 = vmatpush3.msra.mxu1 %v437_v43 }
  0x93   : > { %954 = vmatprep.subr.mxu0 %v452_v46  ;;  %998 = vmatprep.subr.mxu1 %v436_v47 }
  0x94   : > { %955 = vmatpush3.msra.mxu0 %v452_v46  ;;  %956 = vmatprep.mubr.f32.mxu0 %v1521_v27 }
  0x95   : > { %999 = vmatpush3.msra.mxu1 %v436_v47  ;;  %1000 = vmatprep.mubr.f32.mxu1 %v1489_v3 }
  0x96   : > { %957 = vmatmul.mubr.f32.vlgmr.msra.gmra.mxu0 %v1518_v26  ;;  %342 = vadd.xlane.f32.xlu1 %v333_v48 }
  0x97   : > { %1001 = vmatmul.mubr.f32.vlgmr.msra.gmra.mxu1 %v1497_v9  ;;  %340 = vadd.xlane.f32.xlu0 %v332_v49 }
  0x98   : > { %959 = vmatprep.mubr.f32.mxu0 %v1529_v33  ;;  %1003 = vmatprep.mubr.f32.mxu1 %v1486_v2 }
  0x9a   : > { %960 = vmatmul.mubr.f32.gmra.mxu0 %v1526_v32  ;;  %346 = vadd.xlane.f32.xlu1 %v335_v50 }
  0x9b   : > { %1004 = vmatmul.mubr.f32.gmra.mxu1 %v1494_v8  ;;  %344 = vadd.xlane.f32.xlu0 %v334_v51 }
  0x9c   : > { %962 = vmatprep.mubr.f32.mxu0 %v1537_v39  ;;  %1006 = vmatprep.mubr.f32.mxu1 %v1505_v15 }
  0x9e   : > { %963 = vmatmul.mubr.f32.gmra.mxu0 %v1534_v38  ;;  %350 = vadd.xlane.f32.xlu1 %v337_v52 }
  0x9f   : > { %1007 = vmatmul.mubr.f32.gmra.mxu1 %v1502_v14  ;;  %348 = vadd.xlane.f32.xlu0 %v336_v53 }
  0xa0   : > { %965 = vmatprep.mubr.f32.mxu0 %v290_v45  ;;  %1009 = vmatprep.mubr.f32.mxu1 %v1513_v21 }
  0xa2   : > { %966 = vmatmul.mubr.f32.gmra.mxu0 %v291_v44  ;;  %354 = vadd.xlane.f32.xlu1 %v339_v54 }
  0xa3   : > { %1010 = vmatmul.mubr.f32.gmra.mxu1 %v1510_v20  ;;  %352 = vadd.xlane.f32.xlu0 %v338_v55 }
  0xa6   : > { %366 = vadd.xlane.f32.xlu1 %v357_v56 }
  0xa7   : > { %364 = vadd.xlane.f32.xlu0 %v356_v57 }
  0xaa   : > { %370 = vadd.xlane.f32.xlu1 %v359_v58 }
  0xab   : > { %368 = vadd.xlane.f32.xlu0 %v358_v59 }
  0xae   : > { %374 = vadd.xlane.f32.xlu1 %v361_v60 }
  0xaf   : > { %372 = vadd.xlane.f32.xlu0 %v360_v61 }
  0xb2   : > { %378 = vadd.xlane.f32.xlu1 %v363_v62 }
  0xb3   : > { %376 = vadd.xlane.f32.xlu0 %v362_v63 }
  0xf6   : > { %v297_v0 = vpop.xlane.xlu1 %296 }
  0xf7   : > { %v293_v1 = vpop.xlane.xlu0 %292 }
  0xfc   : > { %v299_v2 = vpop.xlane.xlu1 %298  ;;  %v295_v3 = vpop.xlane.xlu0 %294 }
 0x101   : > { %v303_v4 = vpop.xlane.xlu1 %302  ;;  %v301_v5 = vpop.xlane.xlu0 %300 }
 0x106   : > { %v307_v6 = vpop.xlane.xlu1 %306  ;;  %v305_v7 = vpop.xlane.xlu0 %304 }
 0x10b   : > { %v311_v8 = vpop.xlane.xlu1 %310  ;;  %v309_v9 = vpop.xlane.xlu0 %308 }
 0x10c   : > { %v325_v27 = vadd.f32 %v311_v8, %v295_v3  ;;  %v324_v29 = vadd.f32 %v309_v9, %v293_v1 }
 0x10e   : > { %v1585_v31 = vmul.f32 0.00390625, %v325_v27  ;;  %v1587_v36 = vmul.f32 0.00390625, %v324_v29 }
 0x110   : > { %v315_v10 = vpop.xlane.xlu1 %314  ;;  %v313_v11 = vpop.xlane.xlu0 %312  ;;  %v405_v41 = vmul.f32 %v1585_v31, %v1585_v31  ;;  %v404_v47 = vmul.f32 %v1587_v36, %v1587_v36 }
 0x111   : > { %v327_v32 = vadd.f32 %v315_v10, %v299_v2  ;;  %v326_v34 = vadd.f32 %v313_v11, %v297_v0 }
 0x113   : > { %v1591_v42 = vmul.f32 0.00390625, %v327_v32  ;;  %v1593_v45 = vmul.f32 0.00390625, %v326_v34 }
 0x115   : > { %v319_v12 = vpop.xlane.xlu1 %318  ;;  %v317_v13 = vpop.xlane.xlu0 %316  ;;  %v407_v54 = vmul.f32 %v1591_v42, %v1591_v42  ;;  %v406_v58 = vmul.f32 %v1593_v45, %v1593_v45 }
 0x116   : > { %v329_v39 = vadd.f32 %v319_v12, %v303_v4  ;;  %v328_v46 = vadd.f32 %v317_v13, %v301_v5 }
 0x118   : > { %v1597_v51 = vmul.f32 0.00390625, %v329_v39  ;;  %v1603_v59 = vmul.f32 0.00390625, %v328_v46  ;;  %v1626_v39 = vld [vmem:[%s1705_s3 + $0x1] ss:$0 sm:$0xff] }
 0x11a   : > { %v323_v14 = vpop.xlane.xlu1 %322  ;;  %v321_v15 = vpop.xlane.xlu0 %320  ;;  %v409_v2 = vmul.f32 %v1597_v51, %v1597_v51  ;;  %v408_v9 = vmul.f32 %v1603_v59, %v1603_v59 }
 0x11b   : > { %v331_v52 = vadd.f32 %v323_v14, %v307_v6  ;;  %v330_v60 = vadd.f32 %v321_v15, %v305_v7 }
 0x11d   : > { %v1607_v3 = vmul.f32 0.00390625, %v331_v52  ;;  %v1611_v10 = vmul.f32 0.00390625, %v330_v60 }
 0x11f   : > { %v343_v16 = vpop.xlane.xlu1 %342  ;;  %v411_v13 = vmul.f32 %v1607_v3, %v1607_v3 }
 0x120   : > { %v341_v17 = vpop.xlane.xlu0 %340 }
 0x123   : > { %v347_v18 = vpop.xlane.xlu1 %346 }
 0x124   : > { %v345_v19 = vpop.xlane.xlu0 %344 }
 0x127   : > { %v351_v20 = vpop.xlane.xlu1 %350 }
 0x128   : > { %v349_v21 = vpop.xlane.xlu0 %348 }
 0x12b   : > { %v355_v22 = vpop.xlane.xlu1 %354 }
 0x12c   : > { %v353_v23 = vpop.xlane.xlu0 %352 }
 0x12f   : > { %v367_v24 = vpop.xlane.xlu1 %366 }
 0x130   : > { %v365_v25 = vpop.xlane.xlu0 %364  ;;  %v381_v30 = vadd.f32 %v367_v24, %v343_v16  ;;  %v865_v24 = vld [vmem:[%s1705_s3] ss:$0 sm:$0xff] }
 0x131   : > { %v380_v33 = vadd.f32 %v365_v25, %v341_v17  ;;  %v410_v17 = vmul.f32 %v1611_v10, %v1611_v10  ;;  %v684_v32 = vmul.f32 %v865_v24, %v1587_v36  ;;  %v686_v46 = vmul.f32 %v865_v24, %v1593_v45 }
 0x132   : > { %v397_v37 = vmul.f32 0.00390625, %v381_v30 }
 0x133   : > { %v371_v26 = vpop.xlane.xlu1 %370  ;;  %v396_v43 = vmul.f32 0.00390625, %v380_v33 }
 0x134   : > { %v369_v28 = vpop.xlane.xlu0 %368  ;;  %v383_v38 = vadd.f32 %v371_v26, %v347_v18  ;;  %v413_v48 = vsub.f32 %v397_v37, %v405_v41  ;;  %v685_v26 = vmul.f32 %v865_v24, %v1585_v31 }
 0x135   : > { %v382_v44 = vadd.f32 %v369_v28, %v345_v19  ;;  %v412_v55 = vsub.f32 %v396_v43, %v404_v47 }
 0x136   : > { %v399_v49 = vmul.f32 0.00390625, %v383_v38  ;;  %v421_v62 = vadd.f32 1e-05, %v413_v48  ;;  %v687_v38 = vmul.f32 %v865_v24, %v1591_v42 }
 0x137   : > { %v375_v35 = vpop.xlane.xlu1 %374  ;;  %v398_v56 = vmul.f32 0.00390625, %v382_v44  ;;  %v420_v4 = vadd.f32 1e-05, %v412_v55 }
 0x138   : > { %v373_v40 = vpop.xlane.xlu0 %372  ;;  %v385_v50 = vadd.f32 %v375_v35, %v351_v20  ;;  %v415_v63 = vsub.f32 %v399_v49, %v407_v54  ;;  %1079 = vrsqrt.f32 %v421_v62  ;;  %v689_v54 = vmul.f32 %v865_v24, %v1597_v51 }
 0x139   : > { %v384_v57 = vadd.f32 %v373_v40, %v349_v21  ;;  %v414_v5 = vsub.f32 %v398_v56, %v406_v58  ;;  %1081 = vrsqrt.f32 %v420_v4  ;;  %v688_v62 = vmul.f32 %v865_v24, %v1603_v59 }
 0x13a   : > { %v401_v0 = vmul.f32 0.00390625, %v385_v50  ;;  %v423_v7 = vadd.f32 1e-05, %v415_v63 }
 0x13b   : > { %v379_v53 = vpop.xlane.xlu1 %378  ;;  %v400_v6 = vmul.f32 0.00390625, %v384_v57  ;;  %v422_v14 = vadd.f32 1e-05, %v414_v5 }
 0x13c   : > { %v377_v61 = vpop.xlane.xlu0 %376  ;;  %v387_v1 = vadd.f32 %v379_v53, %v355_v22  ;;  %v417_v11 = vsub.f32 %v401_v0, %v409_v2  ;;  %1083 = vrsqrt.f32 %v423_v7 }
 0x13d   : > { %v386_v8 = vadd.f32 %v377_v61, %v353_v23  ;;  %v416_v15 = vsub.f32 %v400_v6, %v408_v9  ;;  %1085 = vrsqrt.f32 %v422_v14  ;;  %v691_v6 = vmul.f32 %v865_v24, %v1607_v3 }
 0x13e   : > { %v403_v12 = vmul.f32 0.00390625, %v387_v1  ;;  %v425_v18 = vadd.f32 1e-05, %v417_v11  ;;  %v690_v14 = vmul.f32 %v865_v24, %v1611_v10 }
 0x13f   : > { %v402_v16 = vmul.f32 0.00390625, %v386_v8  ;;  %v424_v20 = vadd.f32 1e-05, %v416_v15 }
 0x140   : > { %v419_v19 = vsub.f32 %v403_v12, %v411_v13  ;;  %1087 = vrsqrt.f32 %v425_v18 }
 0x141   : > { %v418_v21 = vsub.f32 %v402_v16, %v410_v17  ;;  %1089 = vrsqrt.f32 %v424_v20 }
 0x142   : > { %v427_v22 = vadd.f32 1e-05, %v419_v19 }
 0x143   : > { %v426_v27 = vadd.f32 1e-05, %v418_v21 }
 0x144   : > { %1091 = vrsqrt.f32 %v427_v22 }
 0x145   : > { %v1080_v37 = vpop.eup %1079  ;;  %1093 = vrsqrt.f32 %v426_v27 }
 0x146   : > { %v1082_v36 = vpop.eup %1081 }
 0x149   : > { %v1084_v53 = vpop.eup %1083 }
 0x14a   : > { %v1086_v61 = vpop.eup %1085 }
 0x14d   : > { %v1088_v5 = vpop.eup %1087 }
 0x14e   : > { %v1090_v13 = vpop.eup %1089 }
 0x151   : > { %v1092_v19 = vpop.eup %1091 }
 0x152   : > { %v1094_v10 = vpop.eup %1093 }
 0x156   : > { %v958_v23 = vpop.f32.mrf.mxu0 }
 0x157   : > { %v1002_v25 = vpop.f32.mrf.mxu1 }
 0x158   : > { %v645_v28 = vadd.f32 %v1002_v25, %v958_v23  ;;  %v534_v29 = vpop.f32.mrf.mxu0 }
 0x159   : > { %v639_v30 = vpop.f32.mrf.mxu1 }
 0x15a   : > { %v693_v33 = vsub.f32 %v645_v28, %v685_v26  ;;  %v640_v34 = vadd.f32 %v639_v30, %v534_v29  ;;  %v961_v35 = vpop.f32.mrf.mxu0 }
 0x15b   : > { %v1005_v31 = vpop.f32.mrf.mxu1 }
 0x15c   : > { %v701_v40 = vmul.f32 %v1080_v37, %v693_v33  ;;  %v692_v41 = vsub.f32 %v640_v34, %v684_v32  ;;  %v655_v43 = vadd.f32 %v1005_v31, %v961_v35  ;;  %v544_v44 = vpop.f32.mrf.mxu0 }
 0x15d   : > { %v649_v47 = vpop.f32.mrf.mxu1 }
 0x15e   : > { %v713_v48 = vadd.f32 %v1626_v39, %v701_v40  ;;  %v700_v49 = vmul.f32 %v1082_v36, %v692_v41  ;;  %v695_v42 = vsub.f32 %v655_v43, %v687_v38  ;;  %v650_v50 = vadd.f32 %v649_v47, %v544_v44  ;;  %v964_v52 = vpop.f32.mrf.mxu0 }
 0x15f   : > { %v1008_v55 = vpop.f32.mrf.mxu1 }
 0x160   : > { %721 = vst [vmem:[%s1632_s12 + $0x8] sm:$0xff] %v713_v48  ;;  %v712_v56 = vadd.f32 %v1626_v39, %v700_v49  ;;  %v703_v57 = vmul.f32 %v1084_v53, %v695_v42  ;;  %v694_v45 = vsub.f32 %v650_v50, %v686_v46  ;;  %v665_v58 = vadd.f32 %v1008_v55, %v964_v52  ;;  %v554_v60 = vpop.f32.mrf.mxu0 }
 0x161   : > { %v659_v63 = vpop.f32.mrf.mxu1 }
 0x162   : > { %720 = vst [vmem:[%s1632_s12] sm:$0xff] %v712_v56  ;;  %v715_v51 = vadd.f32 %v1626_v39, %v703_v57  ;;  %v702_v0 = vmul.f32 %v1086_v61, %v694_v45  ;;  %v697_v1 = vsub.f32 %v665_v58, %v689_v54  ;;  %v660_v2 = vadd.f32 %v659_v63, %v554_v60  ;;  %v967_v4 = vpop.f32.mrf.mxu0 }
 0x163   : > { %v1011_v8 = vpop.f32.mrf.mxu1 }
 0x164   : > { %723 = vst [vmem:[%s1632_s12 + $0x18] sm:$0xff] %v715_v51  ;;  %v714_v9 = vadd.f32 %v1626_v39, %v702_v0  ;;  %v705_v7 = vmul.f32 %v1088_v5, %v697_v1  ;;  %v696_v11 = vsub.f32 %v660_v2, %v688_v62  ;;  %v675_v59 = vadd.f32 %v1011_v8, %v967_v4  ;;  %v564_v12 = vpop.f32.mrf.mxu0 }
 0x165   : > { %v669_v15 = vpop.f32.mrf.mxu1 }
 0x166   : > { %722 = vst [vmem:[%s1632_s12 + $0x10] sm:$0xff] %v714_v9  ;;  %v717_v16 = vadd.f32 %v1626_v39, %v705_v7  ;;  %v704_v3 = vmul.f32 %v1090_v13, %v696_v11  ;;  %v699_v17 = vsub.f32 %v675_v59, %v691_v6  ;;  %v670_v18 = vadd.f32 %v669_v15, %v564_v12 }
 0x168   : > { %725 = vst [vmem:[%s1632_s12 + $0x28] sm:$0xff] %v717_v16  ;;  %v716_v20 = vadd.f32 %v1626_v39, %v704_v3  ;;  %v707_v21 = vmul.f32 %v1092_v19, %v699_v17  ;;  %v698_v22 = vsub.f32 %v670_v18, %v690_v14 }
 0x16a   : > { %724 = vst [vmem:[%s1632_s12 + $0x20] sm:$0xff] %v716_v20  ;;  %v719_v23 = vadd.f32 %v1626_v39, %v707_v21  ;;  %v706_v24 = vmul.f32 %v1094_v10, %v698_v22 }
 0x16c   : > { %727 = vst [vmem:[%s1632_s12 + $0x38] sm:$0xff] %v719_v23  ;;  %v718_v25 = vadd.f32 %v1626_v39, %v706_v24 }
 0x16e   : > { %726 = vst [vmem:[%s1632_s12 + $0x30] sm:$0xff] %v718_v25 }
 0x16f   : > { %1191 = shalt.err (!%p1188_p12)
}
 0x170   : > { %s1192_s30 = scalar_lea.hbm %s1654_s0, 1024  ;;  %s1196_s29 = scalar_lea.hbm %s1706_s4, 2048 }
 0x171   : > { %p1193_p1 = scmp.ne.s32.totalorder %s1654_s0, %s1192_s30  ;;  %p1197_p3 = scmp.lt.s32.totalorder %s1654_s0, %s1706_s4 }
 0x172   : > { %p1198_p6 = scmp.lt.s32.totalorder %s1196_s29, %s1192_s30 }
 0x173   : > { %p1194_p0 = pnand %p1193_p1, %p1726_p11 }
 0x174   : > { %p1199_p2 = por %p1198_p6, %p1197_p3 }
 0x175   : > { %p1195_p13 = pneg %p1194_p0 }
 0x177   : > { %p1200_p4 = pnand %p1199_p2, %p1195_p13 }
 0x179   : > { %1203 = shalt.err (!%p1200_p4)
}
 0x17a   : > { %s1259_s10 = smov 128   ;;  %s1260_s20 = smov 8  }
 0x17b   : > { %1020 = dma.vmem_to_hbm [thread:$0]  (%p1726_p11), %s1656_s6, 1024, %s1654_s0, %s729_s19, %s1259_s10, %s1259_s10, %s1260_s20  }
 0x17c PF: > { %s757_s11 = sand.u32 1, %s1238_s15   ;;  %p1727_p7 = scmp.ne.s32.totalorder %s1717_s28, 0 }
 0x17d   : > { %p1728_p8 = scmp.ge.s32.totalorder %s1250_s18, 2  ;;  %s758_s12 = scalar_lea.sflag [#allocation4], %s757_s11 }
 0x17f   : > { %p1034_p9 = pnand %p1728_p8, %p1727_p7 }
 0x181   : > { %p1035_p10 = pneg %p1034_p9 }
 0x183   : > { %1233 = dma.done.wait (%p1035_p10), %s758_s12, 1024  }
 0x184   : > { %1235 = vsyncadd (%p1035_p10), %s758_s12, 4294966272  ;;  %s1729_s5 = sld [smem:[#allocation13_spill]]  ;;  %p20_p5 = scmp.ge.s32.totalorder %s1311_s21, 4  }
 0x185   : > { %s1730_s15 = smov %s1242_s16  ;;  %s1731_s16 = smov %s1246_s17 }
 0x186   : > { %s1733_s18 = smov %s1311_s21  ;;  %22 = sbr.rel (!%p20_p5) target bundleno = 10 (0xa), region = 98 }
 0x18a   : > { %s1732_s17 = smov %s1729_s5 }
 0x18b   :  { %763 = vsyncpa [#allocation3], 1 }
 0x18c   :  { %765 = vsyncpa [#allocation3 + $0x1], 1 }
 0x18d   :  { %766 = vsyncpa [#allocation6], 1 }
 0x18e   :  { %768 = vsyncpa [#allocation6 + $0x1], 1 }
 0x18f   :  { %769 = vsyncpa [#allocation4], 1 }
 0x190   :  { %771 = vsyncpa [#allocation4 + $0x1], 1 }

</bundles_post_ra>
